<compile_context>
chip_gen: v7x
topology: tpu7x:2x2x1
jax: 0.10.0
libtpu: 0.0.40
codegen_flags: <defaults>
</compile_context>

<pallas_src>
import jax
import jax.numpy as jnp
from jax.experimental import pallas as pl
from jax.experimental.pallas import tpu as pltpu

_LANES = 128
_SUBLANES = 8


def _cdiv(a, b):
    return -(-a // b)


def _make_kernel(tile_rows, tiles_per_core, valid_rows, needs_mask):
    """Builds the kernel body with all shape knowledge baked in statically."""

    def kernel(y_pred_ref, y_true_ref, out_ref, acc_bce_ref, acc_sig_ref):
        i = pl.program_id(1)

        @pl.when(i == 0)
        def _init():
            acc_bce_ref[...] = jnp.zeros_like(acc_bce_ref)
            acc_sig_ref[...] = jnp.zeros_like(acc_sig_ref)

        x = y_pred_ref[...].astype(jnp.float32)
        yt = y_true_ref[...].astype(jnp.float32)

        # Stable, divide-free rewrite (3 EUP transcendentals per element):
        #   softplus(x) = max(x,0) + log(1 + exp(-|x|))
        #   yt*log(sig(x)) + (1-yt)*log(1-sig(x)) == yt*x - softplus(x)
        #   sigmoid(x)  = exp(x - softplus(x))     (exact, argument <= 0)
        e = jnp.exp(-jnp.abs(x))                   # in (0, 1], never overflows
        softplus = jnp.maximum(x, 0.0) + jnp.log(1.0 + e)
        sig = jnp.exp(x - softplus)
        bce = yt * x - softplus

        if needs_mask:
            # Ragged tail / rounded core-split grid: zero out rows past the
            # true row count (those rows hold stale VMEM from a partial DMA).
            block = pl.program_id(0) * tiles_per_core + i
            row0 = block * tile_rows
            rid = row0 + jax.lax.broadcasted_iota(jnp.int32, x.shape, 0)
            ok = rid < valid_rows
            bce = jnp.where(ok, bce, 0.0)
            sig = jnp.where(ok, sig, 0.0)

        # Fold the tile contribution down to one vreg-shaped (8,128) partial:
        # reshape groups whole (8,128) sublane tiles, sum(axis=0) is a tree of
        # VALU vreg adds (no cross-lane work).  Accumulator traffic per step
        # is then 2 x 4 KiB instead of 2 x tile_rows x 512 B.
        bce = bce.reshape(tile_rows // _SUBLANES, _SUBLANES, _LANES)
        sig = sig.reshape(tile_rows // _SUBLANES, _SUBLANES, _LANES)
        acc_bce_ref[...] += jnp.sum(bce, axis=0)
        acc_sig_ref[...] += jnp.sum(sig, axis=0)

        @pl.when(i == pl.num_programs(1) - 1)
        def _finalize():
            out_ref[0] = acc_bce_ref[...]
            out_ref[1] = acc_sig_ref[...]

    return kernel


def pue_loss(y_pred, y_true, *, n_p, n_U, alpha,
             tile_rows=2048, num_core_splits=1):
    """Scalar CustomLoss_e. Accepts any shape / dtype; math done in f32.

    num_core_splits: 1 on single-TC chips (v5e/v6e); 2 on v7x to shard the
    row range across the two TensorCores via the leading 'parallel' grid axis.
    """
    n = int(y_pred.size)
    yp = jnp.ravel(y_pred)
    yt = jnp.ravel(y_true)

    # Lane alignment only: reshape to (rows, 128) needs N % 128 == 0.  Padding
    # with y_pred = -1e4 / y_true = 0 contributes *exactly* zero to every sum
    # (softplus(-1e4)=0, sigmoid underflows to 0, yt*x=0).  This copy fires
    # only for lane-unaligned N; ragged rows are masked in-kernel, not padded.
    n128 = _cdiv(n, _LANES) * _LANES
    if n128 != n:
        yp = jnp.pad(yp, (0, n128 - n), constant_values=-1e4)
        yt = jnp.pad(yt, (0, n128 - n), constant_values=0)
    rows = n128 // _LANES
    yp2 = yp.reshape(rows, _LANES)
    yt2 = yt.reshape(rows, _LANES)

    # Tile sizing: large tiles amortize the ~0.35us per-grid-step overhead.
    # Always a multiple of 8 sublanes; clamp to the (rounded-up) row count.
    tile_rows = max(_SUBLANES, (int(tile_rows) // _SUBLANES) * _SUBLANES)
    tile_rows = min(tile_rows, _cdiv(rows, _SUBLANES) * _SUBLANES)

    tiles_total = _cdiv(rows, tile_rows)
    num_core_splits = max(1, min(int(num_core_splits), tiles_total))
    tiles_per_core = _cdiv(tiles_total, num_core_splits)
    clamp = num_core_splits * tiles_per_core > tiles_total
    needs_mask = (tiles_total * tile_rows != rows) or clamp
    last_block = tiles_total - 1

    def in_map(c, i):
        b = c * tiles_per_core + i
        if clamp:
            # Duplicated trailing iterations re-read the last valid block (the
            # pipeline skips the DMA since the index is unchanged); the kernel
            # masks their contribution to exactly zero.
            b = jnp.minimum(b, last_block)
        return (b, 0)

    kernel = _make_kernel(tile_rows, tiles_per_core, rows, needs_mask)

    n_elems = rows * _LANES
    cost = pl.CostEstimate(
        flops=10 * n_elems,
        transcendentals=3 * n_elems,
        bytes_accessed=(yp2.size * yp2.dtype.itemsize
                        + yt2.size * yt2.dtype.itemsize
                        + num_core_splits * 2 * _SUBLANES * _LANES * 4),
    )

    partials = pl.pallas_call(
        kernel,
        out_shape=jax.ShapeDtypeStruct(
            (num_core_splits, 2, _SUBLANES, _LANES), jnp.float32),
        grid_spec=pltpu.PrefetchScalarGridSpec(
            num_scalar_prefetch=0,
            grid=(num_core_splits, tiles_per_core),
            in_specs=[
                pl.BlockSpec((tile_rows, _LANES), in_map),
                pl.BlockSpec((tile_rows, _LANES), in_map),
            ],
            out_specs=pl.BlockSpec((None, 2, _SUBLANES, _LANES),
                                   lambda c, i: (c, 0, 0, 0)),
            scratch_shapes=[
                pltpu.VMEM((_SUBLANES, _LANES), jnp.float32),  # bce partial
                pltpu.VMEM((_SUBLANES, _LANES), jnp.float32),  # sigmoid partial
            ],
        ),
        compiler_params=pltpu.CompilerParams(
            dimension_semantics=("parallel", "arbitrary"),
            vmem_limit_bytes=32 * 1024 * 1024,
        ),
        cost_estimate=cost,
    )(yp2, yt2)

    # Final scalar combine (once, outside the hot loop).
    bce_total = jnp.sum(partials[:, 0])
    sig_total = jnp.sum(partials[:, 1])
    inv = -1.0 / (n_p + n_U)
    return inv * bce_total + alpha * jnp.abs(sig_total - jnp.float32(n_p))


def pue_loss_ref(y_pred, y_true, *, n_p, n_U, alpha):
    """Pure-JAX reference matching the PyTorch forward literally."""
    sig = jax.nn.sigmoid(y_pred.astype(jnp.float32))
    yt = y_true.astype(jnp.float32)
    inv = -1.0 / (n_p + n_U)
    loss1 = jnp.sum(inv * yt * jnp.log(sig))
    loss2 = jnp.sum(inv * (1.0 - yt) * jnp.log(1.0 - sig))
    reg = alpha * jnp.abs(jnp.sum(sig) - n_p)
    return loss1 + loss2 + reg


if __name__ == "__main__":
    key = jax.random.PRNGKey(0)
    k1, k2, k3, k4 = jax.random.split(key, 4)

    # Module-consistent shapes: N = n_p + n_U labeled + unlabeled samples.
    n_p, n_U, alpha = 128, 896, 0.1
    N = n_p + n_U  # 1024 -> exactly (8, 128), no padding, single tile

    y_pred = jax.random.normal(k1, (N,), dtype=jnp.float32)
    y_true = jax.random.bernoulli(k2, p=0.3, shape=(N,)).astype(jnp.float32)

    loss = jax.block_until_ready(
        pue_loss(y_pred, y_true, n_p=n_p, n_U=n_U, alpha=alpha))
    ref = pue_loss_ref(y_pred, y_true, n_p=n_p, n_U=n_U, alpha=alpha)
    assert jnp.allclose(loss, ref, rtol=1e-4, atol=1e-4), (loss, ref)

    # Second tiny check: lane-unaligned N with a partial last block and a
    # rounded 2-way core split -> exercises the pad path, the in-kernel tail
    # mask and the index_map clamp.
    N2 = 20 * 128 + 5
    yp_r = jax.random.normal(k3, (N2,), dtype=jnp.float32)
    yt_r = jax.random.bernoulli(k4, p=0.3, shape=(N2,)).astype(jnp.float32)
    loss2 = jax.block_until_ready(
        pue_loss(yp_r, yt_r, n_p=n_p, n_U=n_U, alpha=alpha,
                 tile_rows=8, num_core_splits=2))
    ref2 = pue_loss_ref(yp_r, yt_r, n_p=n_p, n_U=n_U, alpha=alpha)
    assert jnp.allclose(loss2, ref2, rtol=1e-4, atol=1e-4), (loss2, ref2)

    print("KERNEL_OK")
</pallas_src>

<mosaic_0001>
module attributes {stable_mosaic.version = 11 : i64} {
  func.func @kernel(%arg0: i32, %arg1: i32, %arg2: memref<8x128xf32, #tpu.memory_space<vmem>>, %arg3: memref<8x128xf32, #tpu.memory_space<vmem>>, %arg4: memref<1x2x8x128xf32, #tpu.memory_space<vmem>>, %arg5: memref<8x128xf32, #tpu.memory_space<vmem>>, %arg6: memref<8x128xf32, #tpu.memory_space<vmem>>) attributes {dimension_semantics = [#tpu.dimension_semantics<parallel>, #tpu.dimension_semantics<arbitrary>], iteration_bounds = array<i64: 1, 1>, scalar_prefetch = 0 : i64, scratch_operands = 2 : i64, tpu.core_type = #tpu.core_type<tc>, window_params = [{transform_indices = @transform_0, window_bounds = array<i64: 8, 128>}, {transform_indices = @transform_1, window_bounds = array<i64: 8, 128>}, {transform_indices = @transform_2, window_bounds = array<i64: 1, 2, 8, 128>}]} {
    %c0_i32 = arith.constant 0 : i32
    %0 = arith.cmpi eq, %arg1, %c0_i32 : i32
    %1 = arith.extui %0 : i1 to i32
    %c0_i32_0 = arith.constant 0 : i32
    %2 = arith.cmpi ne, %1, %c0_i32_0 : i32
    scf.if %2 {
      %cst_18 = arith.constant 0.000000e+00 : f32
      %32 = vector.broadcast %cst_18 : f32 to vector<8x128xf32>
      %c0_19 = arith.constant 0 : index
      %c0_20 = arith.constant 0 : index
      %33 = vector.load %arg5[%c0_19, %c0_20] : memref<8x128xf32, #tpu.memory_space<vmem>>, vector<8x128xf32>
      tpu.vector_store %arg5[%c0_19, %c0_20], %32 {strides = array<i32>} : memref<8x128xf32, #tpu.memory_space<vmem>>, vector<8x128xf32>,
      %cst_21 = arith.constant 0.000000e+00 : f32
      %34 = vector.broadcast %cst_21 : f32 to vector<8x128xf32>
      %c0_22 = arith.constant 0 : index
      %c0_23 = arith.constant 0 : index
      %35 = vector.load %arg6[%c0_22, %c0_23] : memref<8x128xf32, #tpu.memory_space<vmem>>, vector<8x128xf32>
      tpu.vector_store %arg6[%c0_22, %c0_23], %34 {strides = array<i32>} : memref<8x128xf32, #tpu.memory_space<vmem>>, vector<8x128xf32>,
    } else {
    }
    %c0 = arith.constant 0 : index
    %c0_1 = arith.constant 0 : index
    %3 = vector.load %arg2[%c0, %c0_1] : memref<8x128xf32, #tpu.memory_space<vmem>>, vector<8x128xf32>
    %c0_2 = arith.constant 0 : index
    %c0_3 = arith.constant 0 : index
    %4 = vector.load %arg3[%c0_2, %c0_3] : memref<8x128xf32, #tpu.memory_space<vmem>>, vector<8x128xf32>
    %5 = math.absf %3 : vector<8x128xf32>
    %cst = arith.constant 0.000000e+00 : f32
    %6 = vector.broadcast %cst : f32 to vector<8x128xf32>
    %7 = arith.subf %6, %5 : vector<8x128xf32>
    %8 = math.exp %7 : vector<8x128xf32>
    %cst_4 = arith.constant 0.000000e+00 : f32
    %9 = vector.broadcast %cst_4 : f32 to vector<8x128xf32>
    %10 = arith.maximumf %3, %9 : vector<8x128xf32>
    %cst_5 = arith.constant 1.000000e+00 : f32
    %11 = vector.broadcast %cst_5 : f32 to vector<8x128xf32>
    %12 = arith.addf %11, %8 : vector<8x128xf32>
    %13 = math.log %12 : vector<8x128xf32>
    %14 = arith.addf %10, %13 : vector<8x128xf32>
    %15 = arith.subf %3, %14 : vector<8x128xf32>
    %16 = math.exp %15 : vector<8x128xf32>
    %17 = arith.mulf %4, %3 : vector<8x128xf32>
    %18 = arith.subf %17, %14 : vector<8x128xf32>
    %19 = vector.shape_cast %18 : vector<8x128xf32> to vector<1x8x128xf32>
    %20 = vector.shape_cast %16 : vector<8x128xf32> to vector<1x8x128xf32>
    %c0_6 = arith.constant 0 : index
    %c0_7 = arith.constant 0 : index
    %21 = vector.load %arg5[%c0_6, %c0_7] : memref<8x128xf32, #tpu.memory_space<vmem>>, vector<8x128xf32>
    %cst_8 = arith.constant dense<0.000000e+00> : vector<8x128xf32>
    %22 = vector.multi_reduction <add>, %19, %cst_8 [0] : vector<1x8x128xf32> to vector<8x128xf32>
    %23 = arith.addf %21, %22 : vector<8x128xf32>
    %c0_9 = arith.constant 0 : index
    %c0_10 = arith.constant 0 : index
    %24 = vector.load %arg5[%c0_9, %c0_10] : memref<8x128xf32, #tpu.memory_space<vmem>>, vector<8x128xf32>
    tpu.vector_store %arg5[%c0_9, %c0_10], %23 {strides = array<i32>} : memref<8x128xf32, #tpu.memory_space<vmem>>, vector<8x128xf32>,
    %c0_11 = arith.constant 0 : index
    %c0_12 = arith.constant 0 : index
    %25 = vector.load %arg6[%c0_11, %c0_12] : memref<8x128xf32, #tpu.memory_space<vmem>>, vector<8x128xf32>
    %cst_13 = arith.constant dense<0.000000e+00> : vector<8x128xf32>
    %26 = vector.multi_reduction <add>, %20, %cst_13 [0] : vector<1x8x128xf32> to vector<8x128xf32>
    %27 = arith.addf %25, %26 : vector<8x128xf32>
    %c0_14 = arith.constant 0 : index
    %c0_15 = arith.constant 0 : index
    %28 = vector.load %arg6[%c0_14, %c0_15] : memref<8x128xf32, #tpu.memory_space<vmem>>, vector<8x128xf32>
    tpu.vector_store %arg6[%c0_14, %c0_15], %27 {strides = array<i32>} : memref<8x128xf32, #tpu.memory_space<vmem>>, vector<8x128xf32>,
    %c0_i32_16 = arith.constant 0 : i32
    %29 = arith.cmpi eq, %arg1, %c0_i32_16 : i32
    %30 = arith.extui %29 : i1 to i32
    %c0_i32_17 = arith.constant 0 : i32
    %31 = arith.cmpi ne, %30, %c0_i32_17 : i32
    scf.if %31 {
      %c0_18 = arith.constant 0 : index
      %c0_19 = arith.constant 0 : index
      %32 = vector.load %arg5[%c0_18, %c0_19] : memref<8x128xf32, #tpu.memory_space<vmem>>, vector<8x128xf32>
      %c0_20 = arith.constant 0 : index
      %c0_21 = arith.constant 0 : index
      %c0_22 = arith.constant 0 : index
      %c0_23 = arith.constant 0 : index
      %33 = vector.load %arg4[%c0_20, %c0_21, %c0_22, %c0_23] : memref<1x2x8x128xf32, #tpu.memory_space<vmem>>, vector<1x1x8x128xf32>
      %34 = vector.shape_cast %33 : vector<1x1x8x128xf32> to vector<8x128xf32>
      %35 = vector.shape_cast %32 : vector<8x128xf32> to vector<1x1x8x128xf32>
      tpu.vector_store %arg4[%c0_20, %c0_21, %c0_22, %c0_23], %35 {strides = array<i32>} : memref<1x2x8x128xf32, #tpu.memory_space<vmem>>, vector<1x1x8x128xf32>,
      %c0_24 = arith.constant 0 : index
      %c0_25 = arith.constant 0 : index
      %36 = vector.load %arg6[%c0_24, %c0_25] : memref<8x128xf32, #tpu.memory_space<vmem>>, vector<8x128xf32>
      %c0_26 = arith.constant 0 : index
      %c1 = arith.constant 1 : index
      %c0_27 = arith.constant 0 : index
      %c0_28 = arith.constant 0 : index
      %37 = vector.load %arg4[%c0_26, %c1, %c0_27, %c0_28] : memref<1x2x8x128xf32, #tpu.memory_space<vmem>>, vector<1x1x8x128xf32>
      %38 = vector.shape_cast %37 : vector<1x1x8x128xf32> to vector<8x128xf32>
      %39 = vector.shape_cast %36 : vector<8x128xf32> to vector<1x1x8x128xf32>
      tpu.vector_store %arg4[%c0_26, %c1, %c0_27, %c0_28], %39 {strides = array<i32>} : memref<1x2x8x128xf32, #tpu.memory_space<vmem>>, vector<1x1x8x128xf32>,
    } else {
    }
    return
  }
  func.func @transform_0(%arg0: i32, %arg1: i32) -> (i32, i32) {
    %c1_i32 = arith.constant 1 : i32
    %0 = arith.muli %arg0, %c1_i32 : i32
    %1 = arith.addi %0, %arg1 : i32
    %c0_i32 = arith.constant 0 : i32
    %c0_i32_0 = arith.constant 0 : i32
    return %1, %c0_i32 : i32, i32
  }
  func.func @transform_1(%arg0: i32, %arg1: i32) -> (i32, i32) {
    %c1_i32 = arith.constant 1 : i32
    %0 = arith.muli %arg0, %c1_i32 : i32
    %1 = arith.addi %0, %arg1 : i32
    %c0_i32 = arith.constant 0 : i32
    %c0_i32_0 = arith.constant 0 : i32
    return %1, %c0_i32 : i32, i32
  }
  func.func @transform_2(%arg0: i32, %arg1: i32) -> (i32, i32, i32, i32) {
    %c0_i32 = arith.constant 0 : i32
    %c0_i32_0 = arith.constant 0 : i32
    %c0_i32_1 = arith.constant 0 : i32
    %c0_i32_2 = arith.constant 0 : i32
    return %arg0, %c0_i32, %c0_i32_0, %c0_i32_1 : i32, i32, i32, i32
  }
}

</mosaic_0001>

<bundles_post_ra>
// kernel: tpu_custom_call.1
= control target key start
LH: loop header
LB: loop body
LE: loop exit
PB: predicated region body
PF: predicated region fallthrough
CT: control target
= control target key end

     0   :  { %7 = vsyncpa [#allocation5], 0  ;;  %s239_s0 = inlined_call_operand.hbm [shape: f32[8,128], index: 0, kind: input, shape index: {}]   ;;  %s240_s1 = inlined_call_operand.hbm [shape: f32[8,128], index: 1, kind: input, shape index: {}]   ;;  %s241_s2 = inlined_call_operand.hbm [shape: f32[1,2,8,128], index: 2, kind: output, shape index: {}]  }
   0x1   :  { %8 = vsyncpa [#allocation8], 0 }
   0x2   :  { %9 = vsyncpa [#allocation6], 0  ;;  %s183_s9 = smov [#allocation4]   ;;  %s184_s11 = smov [#allocation7]  }
   0x3   :  { %s19_s10 = sshll.u32 %s183_s9, 4  ;;  %s32_s12 = sshll.u32 %s184_s11, 4  ;;  %s20_s10 = int_to_ptr.vmem [resolvable:$true] %s19_s10  ;;  %s33_s12 = int_to_ptr.vmem [resolvable:$true] %s32_s12 }
   0x4   :  { %s111_s15 = scalar_lea.hbm %s239_s0, 128 }
   0x5   :  { %p112_p0 = scmp.ne.s32.totalorder %s239_s0, %s111_s15  ;;  %p115_p1 = scmp.lt.u32.totalorder %s111_s15, %s239_s0 }
   0x7   :  { %p117_p2 = pnand %p115_p1, %p112_p0 }
   0x9   :  { %120 = shalt.err (!%p117_p2)
}
   0xa   :  { %s121_s20 = scalar_lea.vmem %s20_s10, 128  ;;  %p126_p4 = scmp.lt.s32.totalorder %s20_s10, %s20_s10 }
   0xb   :  { %p122_p3 = scmp.ne.s32.totalorder %s20_s10, %s121_s20  ;;  %p127_p5 = scmp.lt.s32.totalorder %s121_s20, %s121_s20 }
   0xd   :  { %p128_p6 = por %p127_p5, %p126_p4 }
   0xf   :  { %p129_p7 = pnand %p128_p6, %p122_p3 }
  0x11   :  { %132 = shalt.err (!%p129_p7)
}
  0x12   :  { %22 = dma.hbm_to_vmem [thread:$0]  %s239_s0, 128, %s20_s10, [#allocation5]  }
  0x13   :  { %s133_s25 = scalar_lea.hbm %s240_s1, 128 }
  0x14   :  { %p134_p8 = scmp.ne.s32.totalorder %s240_s1, %s133_s25  ;;  %p137_p9 = scmp.lt.u32.totalorder %s133_s25, %s240_s1 }
  0x16   :  { %p139_p10 = pnand %p137_p9, %p134_p8 }
  0x18   :  { %142 = shalt.err (!%p139_p10)
}
  0x19   :  { %s143_s30 = scalar_lea.vmem %s33_s12, 128  ;;  %p148_p12 = scmp.lt.s32.totalorder %s33_s12, %s33_s12 }
  0x1a   :  { %p144_p11 = scmp.ne.s32.totalorder %s33_s12, %s143_s30  ;;  %p149_p13 = scmp.lt.s32.totalorder %s143_s30, %s143_s30 }
  0x1c   :  { %p150_p0 = por %p149_p13, %p148_p12 }
  0x1e   :  { %p151_p1 = pnand %p150_p0, %p144_p11 }
  0x20   :  { %154 = shalt.err (!%p151_p1)
}
  0x21   :  { %35 = dma.hbm_to_vmem [thread:$0]  %s240_s1, 128, %s33_s12, [#allocation8]  }
  0x22   :  { %177 = dma.done.wait [#allocation5], 128  }
  0x23   :  { %178 = vsyncadd [#allocation5], 4294967168 }
  0x24   :  { %179 = dma.done.wait [#allocation8], 128  }
  0x25   :  { %180 = vsyncadd [#allocation8], 4294967168  ;;  %v50_v0 = vld [vmem:[#allocation4] sm:$0xff]  ;;  %v51_v6 = vld [vmem:[#allocation7] sm:$0xff]  ;;  %s185_s1 = smov [#allocation9]  }
  0x26   :  { %v52_v1 = vand.u32 2147483647, %v50_v0  ;;  %v56_v7 = vmax.f32 %v50_v0, 0.0  ;;  %v64_v10 = vmul.f32 %v51_v6, %v50_v0  ;;  %s87_s4 = sshll.u32 %s185_s1, 4  ;;  %s88_s4 = int_to_ptr.vmem [resolvable:$true] %s87_s4 }
  0x27   :  { %s155_s5 = scalar_lea.vmem %s88_s4, 256  ;;  %p160_p3 = scmp.lt.s32.totalorder %s88_s4, %s88_s4 }
  0x28   :  { %v53_v2 = vsub.f32 0.0, %v52_v1  ;;  %p156_p2 = scmp.ne.s32.totalorder %s88_s4, %s155_s5  ;;  %p161_p4 = scmp.lt.s32.totalorder %s155_s5, %s155_s5 }
  0x2a   :  { %v54_v3 = vmul.f32 1.442695, %v53_v2  ;;  %p162_p5 = por %p161_p4, %p160_p3 }
  0x2c   :  { %105 = vpow2.f32 %v54_v3  ;;  %p163_p6 = pnand %p162_p5, %p156_p2 }
  0x36   :  { %v106_v4 = vpop.eup %105 }
  0x37   :  { %v57_v5 = vadd.f32 1.0, %v106_v4 }
  0x39   :  { %107 = vlog2.f32 %v57_v5 }
  0x43   :  { %v108_v8 = vpop.eup %107 }
  0x44   :  { %v59_v9 = vmul.f32 0.6931472, %v108_v8 }
  0x46   :  { %v60_v11 = vadd.f32 %v59_v9, %v56_v7 }
  0x48   :  { %v61_v12 = vsub.f32 %v50_v0, %v60_v11  ;;  %v65_v13 = vsub.f32 %v64_v10, %v60_v11 }
  0x4a   :  { %v62_v14 = vmul.f32 1.442695, %v61_v12  ;;  %78 = vst [vmem:[#allocation9] sm:$0xff] %v65_v13 }
  0x4c   :  { %109 = vpow2.f32 %v62_v14 }
  0x56   :  { %v110_v15 = vpop.eup %109 }
  0x57   :  { %81 = vst [vmem:[#allocation9 + $0x8] sm:$0xff] %v110_v15 }
  0x58   :  { %166 = shalt.err (!%p163_p6)
}
  0x59   :  { %s167_s8 = scalar_lea.hbm %s241_s2, 256 }
  0x5a   :  { %p168_p7 = scmp.ne.s32.totalorder %s241_s2, %s167_s8  ;;  %p171_p8 = scmp.lt.u32.totalorder %s167_s8, %s241_s2 }
  0x5c   :  { %p173_p9 = pnand %p171_p8, %p168_p7 }
  0x5e   :  { %176 = shalt.err (!%p173_p9)
}
  0x5f   :  { %s186_s13 = smov 128   ;;  %s187_s14 = smov 8  }
  0x60   :  { %93 = dma.vmem_to_hbm [thread:$0]  %s88_s4, 256, %s241_s2, [#allocation6], %s186_s13, %s186_s13, %s187_s14  }
  0x61   :  { %181 = dma.done.wait [#allocation6], 256  }
  0x62   :  { %182 = vsyncadd [#allocation6], 4294967040 }
  0x63   :  { %97 = vsyncpa [#allocation5], 1 }
  0x64   :  { %98 = vsyncpa [#allocation8], 1 }
  0x65   :  { %99 = vsyncpa [#allocation6], 1 }

</bundles_post_ra>
